<compile_context>
chip_gen: v7x
topology: tpu7x:2x2x1
jax: 0.10.0
libtpu: 0.0.40
codegen_flags: <defaults>
</compile_context>

<pallas_src>
import jax
import jax.numpy as jnp
from jax.experimental import pallas as pl
from jax.experimental.pallas import tpu as pltpu


def _dup_upsample_kernel(x_ref, w_ref, b_ref, o_ref):
    # x_ref: (TN, C_in)   w_ref: (C_in, C_out)   b_ref: (1, C_out)
    # o_ref: (TN, r*C_out)  -- lane-dense 2D output block.
    y = jnp.dot(x_ref[...], w_ref[...], preferred_element_type=jnp.float32)
    # Single cast of the (TN, C_out) result (not the r-times-duplicated tensor).
    y = (y + b_ref[...]).astype(o_ref.dtype)
    c_out = w_ref.shape[1]
    r = o_ref.shape[1] // c_out
    # r static lane-slice stores: row n of the output block becomes [y_n | y_n | ... | y_n].
    for j in range(r):
        o_ref[:, j * c_out:(j + 1) * c_out] = y


def _round_up(v, m):
    return ((v + m - 1) // m) * m


def duplicate_upsampler_forward(x, weight, bias, r, *, tile_n=None,
                                vmem_limit_bytes=48 * 1024 * 1024):
    """x: [N, C_in] -> [r*N, C_out].

    weight: [C_out, C_in] (PyTorch nn.Linear layout), bias: [C_out].
    """
    n, c_in = x.shape
    c_out = weight.shape[0]

    w = weight.T                    # [C_in, C_out]  (glue: parameter layout)
    b = bias.reshape(1, c_out)      # 2-D for VMEM

    itemsize = jnp.dtype(x.dtype).itemsize
    if tile_n is None:
        # Budget ~24 MiB for the double-buffered input + output blocks (safe for v7x's
        # smaller 64 MiB physical VMEM as well as v5e/v6e), capped at 2048 rows.
        budget = 24 * 1024 * 1024
        per_row = 2 * (c_in + r * c_out) * itemsize
        tile_n = max(8, min(2048, (budget // per_row) // 8 * 8))
    # Keep at least 2 grid iterations when there is enough work, so the 'parallel'
    # axis can shard across the two TensorCores on v7x.
    if n >= 16:
        tile_n = min(tile_n, _round_up(pl.cdiv(n, 2), 8))
    tile_n = max(8, min(tile_n, _round_up(n, 8)))

    # Pad N up to a multiple of tile_n (no divisibility restriction on N).
    n_pad = _round_up(n, tile_n)
    x_p = x if n_pad == n else jnp.pad(x, ((0, n_pad - n), (0, 0)))

    out = pl.pallas_call(
        _dup_upsample_kernel,
        out_shape=jax.ShapeDtypeStruct((n_pad, r * c_out), x.dtype),
        grid_spec=pl.GridSpec(
            grid=(n_pad // tile_n,),
            in_specs=[
                pl.BlockSpec((tile_n, c_in), lambda i: (i, 0)),   # x tile
                pl.BlockSpec((c_in, c_out), lambda i: (0, 0)),    # full weight
                pl.BlockSpec((1, c_out), lambda i: (0, 0)),       # bias
            ],
            out_specs=pl.BlockSpec((tile_n, r * c_out), lambda i: (i, 0)),
        ),
        compiler_params=pltpu.CompilerParams(
            dimension_semantics=("parallel",),
            vmem_limit_bytes=vmem_limit_bytes,
        ),
    )(x_p, w, b)

    # (N, r*C_out) -> (r*N, C_out): rows come out as [p0, p0, ..., p0, p1, p1, ...]
    # which is exactly repeat 'n c -> (n r) c'.
    return out[:n].reshape(n * r, c_out)


if __name__ == "__main__":
    key = jax.random.PRNGKey(0)
    # Small shapes consistent with the module; r*C_out = 128 keeps the output lane-dense.
    N, C_in, C_out, K, R = 512, 32, 32, 16, 4

    kx, kw, kb = jax.random.split(key, 3)
    x = jax.random.normal(kx, (N, C_in), dtype=jnp.float32)
    # nn.Linear(in_features=C_in, out_features=C_out): weight [C_out, C_in], bias [C_out]
    weight = 0.1 * jax.random.normal(kw, (C_out, C_in), dtype=jnp.float32)
    bias = 0.1 * jax.random.normal(kb, (C_out,), dtype=jnp.float32)

    # TODO(synk): self.gcn (GraphConv) and knn_graph/edge_index exist in __init__/forward
    # of DuplicateUpsampler but never contribute to the returned tensor, so they are omitted.

    out = duplicate_upsampler_forward(x, weight, bias, R)
    out = jax.block_until_ready(out)

    # plain-JAX reference check
    ref = jnp.repeat(x, R, axis=0) @ weight.T + bias
    assert out.shape == (N * R, C_out)
    assert jnp.allclose(out, ref, atol=1e-4, rtol=1e-4)

    print("KERNEL_OK")
</pallas_src>

<mosaic_0001>
module attributes {stable_mosaic.version = 11 : i64} {
  func.func @_dup_upsample_kernel(%arg0: i32, %arg1: memref<256x32xf32, #tpu.memory_space<vmem>>, %arg2: memref<32x32xf32, #tpu.memory_space<vmem>>, %arg3: memref<1x32xf32, #tpu.memory_space<vmem>>, %arg4: memref<256x128xf32, #tpu.memory_space<vmem>>) attributes {dimension_semantics = [#tpu.dimension_semantics<parallel>], iteration_bounds = array<i64: 2>, scalar_prefetch = 0 : i64, scratch_operands = 0 : i64, tpu.core_type = #tpu.core_type<tc>, window_params = [{transform_indices = @transform_0, window_bounds = array<i64: 256, 32>}, {pipeline_mode = #tpu.pipeline_mode<synchronous>, transform_indices = @transform_1, window_bounds = array<i64: 32, 32>}, {pipeline_mode = #tpu.pipeline_mode<synchronous>, transform_indices = @transform_2, window_bounds = array<i64: 1, 32>}, {transform_indices = @transform_3, window_bounds = array<i64: 256, 128>}]} {
    %c0 = arith.constant 0 : index
    %c0_0 = arith.constant 0 : index
    %0 = vector.load %arg1[%c0, %c0_0] : memref<256x32xf32, #tpu.memory_space<vmem>>, vector<256x32xf32>
    %c0_1 = arith.constant 0 : index
    %c0_2 = arith.constant 0 : index
    %1 = vector.load %arg2[%c0_1, %c0_2] : memref<32x32xf32, #tpu.memory_space<vmem>>, vector<32x32xf32>
    %cst = arith.constant dense<0.000000e+00> : vector<256x32xf32>
    %2 = tpu.matmul %0, %1, %cst {dimension_numbers = #tpu.dot_dimension_numbers<[1], [0], [0], [1], [0, 0, 1, 1], [], []>} : vector<256x32xf32>, vector<32x32xf32>, vector<256x32xf32> -> vector<256x32xf32>
    %c0_3 = arith.constant 0 : index
    %c0_4 = arith.constant 0 : index
    %3 = vector.load %arg3[%c0_3, %c0_4] : memref<1x32xf32, #tpu.memory_space<vmem>>, vector<1x32xf32>
    %4 = vector.broadcast %3 : vector<1x32xf32> to vector<256x32xf32>
    %5 = arith.addf %2, %4 : vector<256x32xf32>
    %c0_5 = arith.constant 0 : index
    %c0_6 = arith.constant 0 : index
    %6 = vector.load %arg4[%c0_5, %c0_6] : memref<256x128xf32, #tpu.memory_space<vmem>>, vector<256x32xf32>
    tpu.vector_store %arg4[%c0_5, %c0_6], %5 {strides = array<i32>} : memref<256x128xf32, #tpu.memory_space<vmem>>, vector<256x32xf32>,
    %c0_7 = arith.constant 0 : index
    %c32 = arith.constant 32 : index
    %7 = vector.load %arg4[%c0_7, %c32] : memref<256x128xf32, #tpu.memory_space<vmem>>, vector<256x32xf32>
    tpu.vector_store %arg4[%c0_7, %c32], %5 {strides = array<i32>} : memref<256x128xf32, #tpu.memory_space<vmem>>, vector<256x32xf32>,
    %c0_8 = arith.constant 0 : index
    %c64 = arith.constant 64 : index
    %8 = vector.load %arg4[%c0_8, %c64] : memref<256x128xf32, #tpu.memory_space<vmem>>, vector<256x32xf32>
    tpu.vector_store %arg4[%c0_8, %c64], %5 {strides = array<i32>} : memref<256x128xf32, #tpu.memory_space<vmem>>, vector<256x32xf32>,
    %c0_9 = arith.constant 0 : index
    %c96 = arith.constant 96 : index
    %9 = vector.load %arg4[%c0_9, %c96] : memref<256x128xf32, #tpu.memory_space<vmem>>, vector<256x32xf32>
    tpu.vector_store %arg4[%c0_9, %c96], %5 {strides = array<i32>} : memref<256x128xf32, #tpu.memory_space<vmem>>, vector<256x32xf32>,
    return
  }
  func.func @transform_0(%arg0: i32) -> (i32, i32) {
    %c0_i32 = arith.constant 0 : i32
    %c0_i32_0 = arith.constant 0 : i32
    return %arg0, %c0_i32 : i32, i32
  }
  func.func @transform_1(%arg0: i32) -> (i32, i32) {
    %c0_i32 = arith.constant 0 : i32
    %c0_i32_0 = arith.constant 0 : i32
    %c0_i32_1 = arith.constant 0 : i32
    return %c0_i32, %c0_i32_0 : i32, i32
  }
  func.func @transform_2(%arg0: i32) -> (i32, i32) {
    %c0_i32 = arith.constant 0 : i32
    %c0_i32_0 = arith.constant 0 : i32
    %c0_i32_1 = arith.constant 0 : i32
    return %c0_i32, %c0_i32_0 : i32, i32
  }
  func.func @transform_3(%arg0: i32) -> (i32, i32) {
    %c0_i32 = arith.constant 0 : i32
    %c0_i32_0 = arith.constant 0 : i32
    return %arg0, %c0_i32 : i32, i32
  }
}

</mosaic_0001>

<bundles_post_ra>
// kernel: tpu_custom_call.1
= control target key start
LH: loop header
LB: loop body
LE: loop exit
PB: predicated region body
PF: predicated region fallthrough
CT: control target
= control target key end

     0   :  { %8 = vsyncpa [#allocation3], 0  ;;  %s2110_s0 = inlined_call_operand.vmem [shape: f32[512,32], index: 0, kind: input, shape index: {}]   ;;  %s2111_s1 = inlined_call_operand.vmem [shape: f32[32,32], index: 1, kind: input, shape index: {}]   ;;  %s2112_s2 = inlined_call_operand.vmem [shape: f32[1,32], index: 2, kind: input, shape index: {}]   ;;  %s2113_s3 = inlined_call_operand.hbm [shape: f32[512,128], index: 3, kind: output, shape index: {}]  }
   0x1   :  { %10 = vsyncpa [#allocation3 + $0x1], 0  ;;  %s1348_s12 = smov 0   ;;  %s1350_s13 = smov 0  }
   0x2   :  { %s1352_s14 = smov 0   ;;  %s1354_s15 = smov 0  }
   0x3 LB: > { %s1369_s16 = sadd.s32 4294967295, %s1320_s15   ;;  %s1064_s17 = sadd.s32 4294967294, %s1320_s15   ;;  %s1320_s15 = sphi %s1354_s15, %s2119_s15   ;;  %s1316_s14 = sphi %s1352_s14, %s2118_s14   ;;  %s1312_s13 = sphi %s1350_s13, %s2117_s13   ;;  %s1308_s12 = sphi %s1348_s12, %s2116_s12  }
   0x4   : > { %s1373_s18 = sadd.s32 1, %s1320_s15   ;;  %s91_s19 = sadd.s32 1, %s1316_s14 }
   0x5   : > { %s88_s20 = ssub.s32 %s1320_s15, %s1373_s18  ;;  %p101_p0 = scmp.ne.s32.totalorder %s1316_s14, %s1312_s13 }
   0x6   : > { %p89_p1 = scmp.eq.s32.totalorder %s88_s20, 0  ;;  %p102_p2 = scmp.eq.s32.totalorder %s1369_s16, 1 }
   0x7   : > { %p107_p3 = scmp.ne.s32.totalorder %s1312_s13, %s1308_s12  ;;  %p108_p4 = scmp.eq.s32.totalorder %s1064_s17, 1 }
   0x8   : > { %s1384_s21 = scalar_select %p89_p1, %s1316_s14, %s91_s19  }
   0x9   : > { %p1386_p5 = por %p102_p2, %p101_p0  ;;  %p1390_p6 = por %p108_p4, %p107_p3 }
   0xa   : > { %p1067_p7 = scmp.ge.s32.totalorder %s1320_s15, 1  ;;  %p141_p8 = scmp.lt.s32.totalorder %s1320_s15, 3 }
   0xc   : > { %p142_p9 = pnand %p1067_p7, %p141_p8 }
   0xd   : > { %v204_v0 = vld [vmem:[%s2111_s1] sm:$0xff] (!%p142_p9)  ;;  %v205_v1 = vld [vmem:[%s2111_s1 + $0x8] sm:$0xff] (!%p142_p9)  ;;  %v206_v2 = vld [vmem:[%s2111_s1 + $0x10] sm:$0xff] (!%p142_p9)  ;;  %s1069_s30 = sshll.u32 (!%p142_p9), %s1369_s16, 5  ;;  %vm215_vm0 = vcmask (!%p142_p9), 261120   ;;  %s162_s10 = sand.u32 (!%p142_p9), 1, %s1312_s13  }
   0xe   : > { %145 = sbr.rel (%p142_p9) target bundleno = 559 (0x22f), region = 32  ;;  %v1202_v3 = vpack.c.bf16 (!%p142_p9), %v205_v1, %v204_v0  ;;  %v207_v4 = vld [vmem:[%s2111_s1 + $0x18] sm:$0xff] (!%p142_p9)  ;;  %p166_p10 = scmp.lt.s32.totalorder (!%p142_p9), %s1069_s30, 63  ;;  %v1484_v38 = vld [vmem:[%s2112_s2] ss:$0 sm:$0xff] (!%p142_p9)  ;;  %vm697_vm1 = vcmask (!%p142_p9), 523520  }
   0xf   : > { %v1206_v5 = vpack.c.bf16 (!%p142_p9), %v207_v4, %v206_v2  ;;  %s1068_s11 = sshll.u32 (!%p142_p9), %s162_s10, 8  ;;  %s1322_s20 = smov (!%p142_p9), 32   ;;  %vm826_vm2 = vcmask (!%p142_p9), 785920   ;;  %vm955_vm3 = vcmask (!%p142_p9), 1048320  }
  0x10   : > { %1203 = vmatprep.subr.bf16.mxu0 (!%p142_p9), %v1202_v3  ;;  %1210 = vmatprep.subr.bf16.mxu1 (!%p142_p9), %v1202_v3  ;;  %s1499_s24 = scalar_lea.vmem (!%p142_p9), [#allocation2], %s1068_s11  ;;  %s1323_s25 = smov (!%p142_p9), 64  }
  0x11   : > { %1205 = vmatpush3.bf16.msra.mxu0 (!%p142_p9), %v1202_v3  ;;  %1212 = vmatpush3.bf16.msra.mxu1 (!%p142_p9), %v1202_v3  ;;  %s1324_s26 = smov (!%p142_p9), 96   ;;  %s1109_s27 = sshll.u32 (!%p142_p9), %s1369_s16, 12 }
  0x12   : > { %1207 = vmatprep.subr.bf16.mxu0 (!%p142_p9), %v1206_v5  ;;  %1211 = vmatprep.subr.bf16.mxu1 (!%p142_p9), %v1206_v5  ;;  %s1002_s28 = sshll.u32 (!%p142_p9), %s1499_s24, 4  ;;  %s2059_s4 = scalar_lea.hbm (!%p142_p9), %s2113_s3, %s1109_s27  ;;  %s2061_s28 = int_to_ptr.vmem [resolvable:$true] %s1002_s28 }
  0x13   : > { %s2069_s16 = scalar_lea.sflag (!%p142_p9), [#allocation3], %s162_s10  ;;  %s1258_s5 = scalar_lea.vmem (!%p142_p9), %s2061_s28, 4096 }
  0x14   : > { %p1259_p11 = scmp.ne.s32.totalorder (!%p142_p9), %s2061_s28, %s1258_s5 }
  0x15   : > { %s2121_s30 = smov (!%p166_p10, %s1069_s30), 63  ;;  %1209 = vmatpush3.bf16.msra.mxu0 %v1206_v5  ;;  %1213 = vmatpush3.bf16.msra.mxu1 %v1206_v5 }
  0x16   : > { %s1070_s6 = sshll.u32 %s2121_s30, 3  ;;  %p1260_p12 = pnand %p1259_p11, %p1386_p5 }
  0x17   : > { %s1412_s9 = scalar_lea.vmem %s2110_s0, %s1070_s6  ;;  %s1325_s6 = smov [#allocation2]  }
  0x18   : > { %v172_v6 = vld [vmem:[%s1412_s9] sm:$0xff]  ;;  %v173_v8 = vld [vmem:[%s1412_s9 + $0x8] sm:$0xff]  ;;  %v174_v10 = vld [vmem:[%s1412_s9 + $0x10] sm:$0xff]  ;;  %p1261_p13 = pneg %p1260_p12  ;;  %s1262_s7 = sshll.u32 %s1325_s6, 4  ;;  %s1263_s7 = int_to_ptr.vmem [resolvable:$false] %s1262_s7 }
  0x19   : > { %v188_v7 = vld [vmem:[%s1412_s9 + $0x80] sm:$0xff]  ;;  %v189_v9 = vld [vmem:[%s1412_s9 + $0x88] sm:$0xff]  ;;  %1154 = vmatprep.mubr.msk.f32.mxu0 %vm215_vm0, %v172_v6  ;;  %v190_v11 = vld [vmem:[%s1412_s9 + $0x90] sm:$0xff]  ;;  %s1264_s8 = scalar_lea.vmem %s1263_s7, 8192  ;;  %p1265_p0 = scmp.lt.s32.totalorder %s2061_s28, %s1263_s7 }
  0x1a   : > { %1178 = vmatprep.mubr.msk.f32.mxu1 %vm215_vm0, %v188_v7  ;;  %1155 = vmatmul.mubr.msk.f32.vlgmr.msra.gmra.mrb[0].mxu0 %vm215_vm0, %v173_v8  ;;  %v175_v12 = vld [vmem:[%s1412_s9 + $0x18] sm:$0xff]  ;;  %v176_v14 = vld [vmem:[%s1412_s9 + $0x20] sm:$0xff]  ;;  %v177_v16 = vld [vmem:[%s1412_s9 + $0x28] sm:$0xff]  ;;  %p1266_p1 = scmp.lt.s32.totalorder %s1264_s8, %s1258_s5 }
  0x1b   : > { %1179 = vmatmul.mubr.msk.f32.vlgmr.msra.gmra.mrb[0].mxu1 %vm215_vm0, %v189_v9  ;;  %1157 = vmatprep.mubr.msk.f32.mxu0 %vm215_vm0, %v174_v10  ;;  %v191_v13 = vld [vmem:[%s1412_s9 + $0x98] sm:$0xff]  ;;  %v192_v15 = vld [vmem:[%s1412_s9 + $0xa0] sm:$0xff]  ;;  %v193_v17 = vld [vmem:[%s1412_s9 + $0xa8] sm:$0xff] }
  0x1c   : > { %1181 = vmatprep.mubr.msk.f32.mxu1 %vm215_vm0, %v190_v11  ;;  %v178_v18 = vld [vmem:[%s1412_s9 + $0x30] sm:$0xff]  ;;  %v179_v20 = vld [vmem:[%s1412_s9 + $0x38] sm:$0xff]  ;;  %v180_v22 = vld [vmem:[%s1412_s9 + $0x40] sm:$0xff]  ;;  %p1267_p2 = por %p1266_p1, %p1265_p0 }
  0x1d   : > { %v194_v19 = vld [vmem:[%s1412_s9 + $0xb0] sm:$0xff]  ;;  %v195_v21 = vld [vmem:[%s1412_s9 + $0xb8] sm:$0xff]  ;;  %v196_v23 = vld [vmem:[%s1412_s9 + $0xc0] sm:$0xff] }
  0x1e   : > { %1158 = vmatmul.mubr.msk.f32.gmra.mrb[2].mxu0 %vm215_vm0, %v175_v12  ;;  %v181_v24 = vld [vmem:[%s1412_s9 + $0x48] sm:$0xff]  ;;  %v182_v26 = vld [vmem:[%s1412_s9 + $0x50] sm:$0xff]  ;;  %v183_v28 = vld [vmem:[%s1412_s9 + $0x58] sm:$0xff]  ;;  %p1268_p3 = pnand %p1267_p2, %p1261_p13 }
  0x1f   : > { %1182 = vmatmul.mubr.msk.f32.gmra.mrb[2].mxu1 %vm215_vm0, %v191_v13  ;;  %1160 = vmatprep.mubr.msk.f32.mxu0 %vm215_vm0, %v176_v14  ;;  %v197_v25 = vld [vmem:[%s1412_s9 + $0xc8] sm:$0xff]  ;;  %v198_v27 = vld [vmem:[%s1412_s9 + $0xd0] sm:$0xff]  ;;  %v199_v29 = vld [vmem:[%s1412_s9 + $0xd8] sm:$0xff] }
  0x20   : > { %1184 = vmatprep.mubr.msk.f32.mxu1 %vm215_vm0, %v192_v15  ;;  %v184_v30 = vld [vmem:[%s1412_s9 + $0x60] sm:$0xff]  ;;  %v185_v32 = vld [vmem:[%s1412_s9 + $0x68] sm:$0xff]  ;;  %v186_v34 = vld [vmem:[%s1412_s9 + $0x70] sm:$0xff] }
  0x21   : > { %v200_v31 = vld [vmem:[%s1412_s9 + $0xe0] sm:$0xff]  ;;  %v201_v33 = vld [vmem:[%s1412_s9 + $0xe8] sm:$0xff]  ;;  %v202_v35 = vld [vmem:[%s1412_s9 + $0xf0] sm:$0xff] }
  0x22   : > { %1161 = vmatmul.mubr.msk.f32.gmra.mrb[4].mxu0 %vm215_vm0, %v177_v16  ;;  %v187_v36 = vld [vmem:[%s1412_s9 + $0x78] sm:$0xff] }
  0x23   : > { %1185 = vmatmul.mubr.msk.f32.gmra.mrb[4].mxu1 %vm215_vm0, %v193_v17  ;;  %1163 = vmatprep.mubr.msk.f32.mxu0 %vm215_vm0, %v178_v18  ;;  %v203_v37 = vld [vmem:[%s1412_s9 + $0xf8] sm:$0xff] }
  0x24   : > { %1187 = vmatprep.mubr.msk.f32.mxu1 %vm215_vm0, %v194_v19 }
  0x26   : > { %1164 = vmatmul.mubr.msk.f32.gmra.mrb[6].mxu0 %vm215_vm0, %v179_v20 }
  0x27   : > { %1188 = vmatmul.mubr.msk.f32.gmra.mrb[6].mxu1 %vm215_vm0, %v195_v21  ;;  %1166 = vmatprep.mubr.msk.f32.mxu0 %vm215_vm0, %v180_v22 }
  0x28   : > { %1190 = vmatprep.mubr.msk.f32.mxu1 %vm215_vm0, %v196_v23 }
  0x2a   : > { %1167 = vmatmul.mubr.msk.f32.gmra.mrb[8].mxu0 %vm215_vm0, %v181_v24 }
  0x2b   : > { %1191 = vmatmul.mubr.msk.f32.gmra.mrb[8].mxu1 %vm215_vm0, %v197_v25  ;;  %1169 = vmatprep.mubr.msk.f32.mxu0 %vm215_vm0, %v182_v26 }
  0x2c   : > { %1193 = vmatprep.mubr.msk.f32.mxu1 %vm215_vm0, %v198_v27 }
  0x2e   : > { %1170 = vmatmul.mubr.msk.f32.gmra.mrb[10].mxu0 %vm215_vm0, %v183_v28 }
  0x2f   : > { %1194 = vmatmul.mubr.msk.f32.gmra.mrb[10].mxu1 %vm215_vm0, %v199_v29  ;;  %1172 = vmatprep.mubr.msk.f32.mxu0 %vm215_vm0, %v184_v30 }
  0x30   : > { %1196 = vmatprep.mubr.msk.f32.mxu1 %vm215_vm0, %v200_v31 }
  0x32   : > { %1173 = vmatmul.mubr.msk.f32.gmra.mrb[12].mxu0 %vm215_vm0, %v185_v32 }
  0x33   : > { %1197 = vmatmul.mubr.msk.f32.gmra.mrb[12].mxu1 %vm215_vm0, %v201_v33  ;;  %1175 = vmatprep.mubr.msk.f32.mxu0 %vm215_vm0, %v186_v34 }
  0x34   : > { %1199 = vmatprep.mubr.msk.f32.mxu1 %vm215_vm0, %v202_v35 }
  0x36   : > { %1176 = vmatmul.mubr.msk.f32.gmra.mrb[14].mxu0 %vm215_vm0, %v187_v36 }
  0x37   : > { %1200 = vmatmul.mubr.msk.f32.gmra.mrb[14].mxu1 %vm215_vm0, %v203_v37 }
  0xed   : > { %v1156_v39 = vpop.f32.mrb[0].mxu0 }
  0xee   : > { %v1180_v40 = vpop.f32.mrb[0].mxu1  ;;  %v384_v41 = vadd.f32 %v1156_v39, %v1484_v38  ;;  %v378_v43 = vpop.f32.mrb[1].mxu0 }
  0xef   : > { %v1488_v42 = vadd.f32 %v1180_v40, %v1484_v38  ;;  %v458_v44 = vpop.f32.mrb[1].mxu1  ;;  %v1491_v45 = vadd.f32 %v1484_v38, %v378_v43 }
  0xf0   : > { %v1494_v46 = vadd.f32 %v1484_v38, %v458_v44  ;;  %603 = vrot.lane.b32.xlu0 %v384_v41, %s1322_s20  ;;  %538 = vst.msk [vmem:[%s1499_s24 + $0x8] sm:$0xff] %vm215_vm0, %v384_v41 }
  0xf1   : > { %635 = vrot.lane.b32.xlu1 %v1488_v42, %s1322_s20  ;;  %554 = vst.msk [vmem:[%s1499_s24 + $0x88] sm:$0xff] %vm215_vm0, %v1488_v42  ;;  %v1159_v47 = vpop.f32.mrb[2].mxu0  ;;  %537 = vst.msk [vmem:[%s1499_s24] sm:$0xff] %vm215_vm0, %v1491_v45 }
  0xf2   : > { %v1183_v48 = vpop.f32.mrb[2].mxu1  ;;  %553 = vst.msk [vmem:[%s1499_s24 + $0x80] sm:$0xff] %vm215_vm0, %v1494_v46  ;;  %v1513_v49 = vadd.f32 %v1159_v47, %v1484_v38  ;;  %v388_v50 = vpop.f32.mrb[3].mxu0 }
  0xf3   : > { %v1516_v51 = vadd.f32 %v1183_v48, %v1484_v38  ;;  %v468_v52 = vpop.f32.mrb[3].mxu1  ;;  %v1519_v53 = vadd.f32 %v1484_v38, %v388_v50 }
  0xf4   : > { %v1522_v54 = vadd.f32 %v1484_v38, %v468_v52  ;;  %601 = vrot.lane.b32.xlu0 %v1491_v45, %s1322_s20  ;;  %540 = vst.msk [vmem:[%s1499_s24 + $0x18] sm:$0xff] %vm215_vm0, %v1513_v49 }
  0xf5   : > { %732 = vrot.lane.b32.xlu1 %v384_v41, %s1323_s25  ;;  %556 = vst.msk [vmem:[%s1499_s24 + $0x98] sm:$0xff] %vm215_vm0, %v1516_v51  ;;  %v1162_v55 = vpop.f32.mrb[4].mxu0  ;;  %539 = vst.msk [vmem:[%s1499_s24 + $0x10] sm:$0xff] %vm215_vm0, %v1519_v53 }
  0xf6   : > { %v1186_v56 = vpop.f32.mrb[4].mxu1  ;;  %555 = vst.msk [vmem:[%s1499_s24 + $0x90] sm:$0xff] %vm215_vm0, %v1522_v54  ;;  %v1540_v57 = vadd.f32 %v1162_v55, %v1484_v38  ;;  %v398_v58 = vpop.f32.mrb[5].mxu0 }
  0xf7   : > { %v1543_v59 = vadd.f32 %v1186_v56, %v1484_v38  ;;  %v478_v60 = vpop.f32.mrb[5].mxu1  ;;  %v1546_v61 = vadd.f32 %v1484_v38, %v398_v58 }
  0xf8   : > { %v1549_v62 = vadd.f32 %v1484_v38, %v478_v60  ;;  %633 = vrot.lane.b32.xlu0 %v1494_v46, %s1322_s20  ;;  %542 = vst.msk [vmem:[%s1499_s24 + $0x28] sm:$0xff] %vm215_vm0, %v1540_v57 }
  0xf9   : > { %764 = vrot.lane.b32.xlu1 %v1488_v42, %s1323_s25  ;;  %558 = vst.msk [vmem:[%s1499_s24 + $0xa8] sm:$0xff] %vm215_vm0, %v1543_v59  ;;  %v1165_v63 = vpop.f32.mrb[6].mxu0  ;;  %541 = vst.msk [vmem:[%s1499_s24 + $0x20] sm:$0xff] %vm215_vm0, %v1546_v61 }
  0xfa   : > { %v1189_v0 = vpop.f32.mrb[6].mxu1  ;;  %557 = vst.msk [vmem:[%s1499_s24 + $0xa0] sm:$0xff] %vm215_vm0, %v1549_v62  ;;  %v1568_v1 = vadd.f32 %v1165_v63, %v1484_v38  ;;  %v408_v2 = vpop.f32.mrb[7].mxu0 }
  0xfb   : > { %v1571_v3 = vadd.f32 %v1189_v0, %v1484_v38  ;;  %v488_v4 = vpop.f32.mrb[7].mxu1  ;;  %v1574_v5 = vadd.f32 %v1484_v38, %v408_v2 }
  0xfc   : > { %v1577_v6 = vadd.f32 %v1484_v38, %v488_v4  ;;  %730 = vrot.lane.b32.xlu0 %v1491_v45, %s1323_s25  ;;  %544 = vst.msk [vmem:[%s1499_s24 + $0x38] sm:$0xff] %vm215_vm0, %v1568_v1 }
  0xfd   : > { %861 = vrot.lane.b32.xlu1 %v384_v41, %s1324_s26  ;;  %560 = vst.msk [vmem:[%s1499_s24 + $0xb8] sm:$0xff] %vm215_vm0, %v1571_v3  ;;  %v1168_v7 = vpop.f32.mrb[8].mxu0  ;;  %543 = vst.msk [vmem:[%s1499_s24 + $0x30] sm:$0xff] %vm215_vm0, %v1574_v5 }
  0xfe   : > { %v1192_v8 = vpop.f32.mrb[8].mxu1  ;;  %559 = vst.msk [vmem:[%s1499_s24 + $0xb0] sm:$0xff] %vm215_vm0, %v1577_v6  ;;  %v1595_v9 = vadd.f32 %v1168_v7, %v1484_v38  ;;  %v418_v10 = vpop.f32.mrb[9].mxu0 }
  0xff   : > { %v1598_v11 = vadd.f32 %v1192_v8, %v1484_v38  ;;  %v498_v12 = vpop.f32.mrb[9].mxu1  ;;  %v1601_v13 = vadd.f32 %v1484_v38, %v418_v10 }
 0x100   : > { %v1604_v14 = vadd.f32 %v1484_v38, %v498_v12  ;;  %762 = vrot.lane.b32.xlu0 %v1494_v46, %s1323_s25  ;;  %546 = vst.msk [vmem:[%s1499_s24 + $0x48] sm:$0xff] %vm215_vm0, %v1595_v9 }
 0x101   : > { %893 = vrot.lane.b32.xlu1 %v1488_v42, %s1324_s26  ;;  %562 = vst.msk [vmem:[%s1499_s24 + $0xc8] sm:$0xff] %vm215_vm0, %v1598_v11  ;;  %545 = vst.msk [vmem:[%s1499_s24 + $0x40] sm:$0xff] %vm215_vm0, %v1601_v13  ;;  %v1171_v15 = vpop.f32.mrb[10].mxu0 }
 0x102   : > { %561 = vst.msk [vmem:[%s1499_s24 + $0xc0] sm:$0xff] %vm215_vm0, %v1604_v14  ;;  %v1195_v16 = vpop.f32.mrb[10].mxu1  ;;  %v1623_v17 = vadd.f32 %v1171_v15, %v1484_v38  ;;  %v428_v18 = vpop.f32.mrb[11].mxu0 }
 0x103   : > { %v1626_v19 = vadd.f32 %v1195_v16, %v1484_v38  ;;  %v508_v20 = vpop.f32.mrb[11].mxu1  ;;  %v1629_v21 = vadd.f32 %v1484_v38, %v428_v18 }
 0x104   : > { %v1632_v22 = vadd.f32 %v1484_v38, %v508_v20  ;;  %859 = vrot.lane.b32.xlu0 %v1491_v45, %s1324_s26  ;;  %548 = vst.msk [vmem:[%s1499_s24 + $0x58] sm:$0xff] %vm215_vm0, %v1623_v17 }
 0x105   : > { %607 = vrot.lane.b32.xlu1 %v1513_v49, %s1322_s20  ;;  %564 = vst.msk [vmem:[%s1499_s24 + $0xd8] sm:$0xff] %vm215_vm0, %v1626_v19  ;;  %547 = vst.msk [vmem:[%s1499_s24 + $0x50] sm:$0xff] %vm215_vm0, %v1629_v21  ;;  %v1174_v23 = vpop.f32.mrb[12].mxu0 }
 0x106   : > { %563 = vst.msk [vmem:[%s1499_s24 + $0xd0] sm:$0xff] %vm215_vm0, %v1632_v22  ;;  %v1198_v24 = vpop.f32.mrb[12].mxu1  ;;  %v1651_v25 = vadd.f32 %v1174_v23, %v1484_v38  ;;  %v438_v26 = vpop.f32.mrb[13].mxu0 }
 0x107   : > { %v1654_v27 = vadd.f32 %v1198_v24, %v1484_v38  ;;  %v518_v28 = vpop.f32.mrb[13].mxu1  ;;  %v1657_v29 = vadd.f32 %v1484_v38, %v438_v26 }
 0x108   : > { %v1660_v30 = vadd.f32 %v1484_v38, %v518_v28  ;;  %891 = vrot.lane.b32.xlu0 %v1494_v46, %s1324_s26  ;;  %550 = vst.msk [vmem:[%s1499_s24 + $0x68] sm:$0xff] %vm215_vm0, %v1651_v25 }
 0x109   : > { %639 = vrot.lane.b32.xlu1 %v1516_v51, %s1322_s20  ;;  %566 = vst.msk [vmem:[%s1499_s24 + $0xe8] sm:$0xff] %vm215_vm0, %v1654_v27  ;;  %549 = vst.msk [vmem:[%s1499_s24 + $0x60] sm:$0xff] %vm215_vm0, %v1657_v29  ;;  %v1177_v31 = vpop.f32.mrb[14].mxu0 }
 0x10a   : > { %565 = vst.msk [vmem:[%s1499_s24 + $0xe0] sm:$0xff] %vm215_vm0, %v1660_v30  ;;  %v1691_v32 = vadd.f32 %v1177_v31, %v1484_v38  ;;  %v448_v33 = vpop.f32.mrb[15].mxu0  ;;  %v1201_v35 = vpop.f32.mrb[14].mxu1 }
 0x10b   : > { %v1694_v34 = vadd.f32 %v1484_v38, %v448_v33  ;;  %v1707_v36 = vadd.f32 %v1201_v35, %v1484_v38  ;;  %v528_v37 = vpop.f32.mrb[15].mxu1 }
 0x10c   : > { %637 = vrot.lane.b32.xlu0 %v1522_v54, %s1322_s20  ;;  %552 = vst.msk [vmem:[%s1499_s24 + $0x78] sm:$0xff] %vm215_vm0, %v1691_v32  ;;  %v1710_v39 = vadd.f32 %v1484_v38, %v528_v37 }
 0x10d   : > { %736 = vrot.lane.b32.xlu1 %v1513_v49, %s1323_s25  ;;  %551 = vst.msk [vmem:[%s1499_s24 + $0x70] sm:$0xff] %vm215_vm0, %v1694_v34  ;;  %568 = vst.msk [vmem:[%s1499_s24 + $0xf8] sm:$0xff] %vm215_vm0, %v1707_v36 }
 0x10e   : > { %567 = vst.msk [vmem:[%s1499_s24 + $0xf0] sm:$0xff] %vm215_vm0, %v1710_v39 }
 0x110   : > { %734 = vrot.lane.b32.xlu0 %v1519_v53, %s1323_s25 }
 0x111   : > { %768 = vrot.lane.b32.xlu1 %v1516_v51, %s1323_s25 }
 0x114   : > { %766 = vrot.lane.b32.xlu0 %v1522_v54, %s1323_s25 }
 0x115   : > { %865 = vrot.lane.b32.xlu1 %v1513_v49, %s1324_s26 }
 0x118   : > { %863 = vrot.lane.b32.xlu0 %v1519_v53, %s1324_s26 }
 0x119   : > { %897 = vrot.lane.b32.xlu1 %v1516_v51, %s1324_s26 }
 0x11c   : > { %895 = vrot.lane.b32.xlu0 %v1522_v54, %s1324_s26 }
 0x11d   : > { %605 = vrot.lane.b32.xlu1 %v1519_v53, %s1322_s20 }
 0x120   : > { %609 = vrot.lane.b32.xlu0 %v1546_v61, %s1322_s20 }
 0x121   : > { %611 = vrot.lane.b32.xlu1 %v1540_v57, %s1322_s20 }
 0x124   : > { %641 = vrot.lane.b32.xlu0 %v1549_v62, %s1322_s20 }
 0x125   : > { %643 = vrot.lane.b32.xlu1 %v1543_v59, %s1322_s20 }
 0x128   : > { %738 = vrot.lane.b32.xlu0 %v1546_v61, %s1323_s25 }
 0x129   : > { %740 = vrot.lane.b32.xlu1 %v1540_v57, %s1323_s25 }
 0x12c   : > { %770 = vrot.lane.b32.xlu0 %v1549_v62, %s1323_s25 }
 0x12d   : > { %772 = vrot.lane.b32.xlu1 %v1543_v59, %s1323_s25 }
 0x130   : > { %867 = vrot.lane.b32.xlu0 %v1546_v61, %s1324_s26 }
 0x131   : > { %869 = vrot.lane.b32.xlu1 %v1540_v57, %s1324_s26 }
 0x134   : > { %899 = vrot.lane.b32.xlu0 %v1549_v62, %s1324_s26 }
 0x135   : > { %901 = vrot.lane.b32.xlu1 %v1543_v59, %s1324_s26 }
 0x138   : > { %613 = vrot.lane.b32.xlu0 %v1574_v5, %s1322_s20 }
 0x139   : > { %615 = vrot.lane.b32.xlu1 %v1568_v1, %s1322_s20 }
 0x13c   : > { %645 = vrot.lane.b32.xlu0 %v1577_v6, %s1322_s20 }
 0x13d   : > { %647 = vrot.lane.b32.xlu1 %v1571_v3, %s1322_s20 }
 0x140   : > { %742 = vrot.lane.b32.xlu0 %v1574_v5, %s1323_s25 }
 0x141   : > { %744 = vrot.lane.b32.xlu1 %v1568_v1, %s1323_s25 }
 0x144   : > { %774 = vrot.lane.b32.xlu0 %v1577_v6, %s1323_s25 }
 0x145   : > { %776 = vrot.lane.b32.xlu1 %v1571_v3, %s1323_s25 }
 0x148   : > { %871 = vrot.lane.b32.xlu0 %v1574_v5, %s1324_s26 }
 0x149   : > { %873 = vrot.lane.b32.xlu1 %v1568_v1, %s1324_s26 }
 0x14c   : > { %903 = vrot.lane.b32.xlu0 %v1577_v6, %s1324_s26 }
 0x14d   : > { %905 = vrot.lane.b32.xlu1 %v1571_v3, %s1324_s26 }
 0x150   : > { %617 = vrot.lane.b32.xlu0 %v1601_v13, %s1322_s20 }
 0x151   : > { %619 = vrot.lane.b32.xlu1 %v1595_v9, %s1322_s20 }
 0x154   : > { %649 = vrot.lane.b32.xlu0 %v1604_v14, %s1322_s20 }
 0x155   : > { %651 = vrot.lane.b32.xlu1 %v1598_v11, %s1322_s20 }
 0x158   : > { %746 = vrot.lane.b32.xlu0 %v1601_v13, %s1323_s25 }
 0x159   : > { %748 = vrot.lane.b32.xlu1 %v1595_v9, %s1323_s25 }
 0x15c   : > { %778 = vrot.lane.b32.xlu0 %v1604_v14, %s1323_s25 }
 0x15d   : > { %780 = vrot.lane.b32.xlu1 %v1598_v11, %s1323_s25 }
 0x160   : > { %875 = vrot.lane.b32.xlu0 %v1601_v13, %s1324_s26 }
 0x161   : > { %877 = vrot.lane.b32.xlu1 %v1595_v9, %s1324_s26 }
 0x162   : > { %v604_v40 = vpop.permute.xlu0 %603 }
 0x163   : > { %v636_v38 = vpop.permute.xlu1 %635  ;;  %699 = vst.msk [vmem:[%s1499_s24 + $0x8] sm:$0xff] %vm697_vm1, %v604_v40 }
 0x164   : > { %715 = vst.msk [vmem:[%s1499_s24 + $0x88] sm:$0xff] %vm697_vm1, %v636_v38  ;;  %907 = vrot.lane.b32.xlu0 %v1604_v14, %s1324_s26 }
 0x165   : > { %909 = vrot.lane.b32.xlu1 %v1598_v11, %s1324_s26 }
 0x166   : > { %v602_v42 = vpop.permute.xlu0 %601 }
 0x167   : > { %v733_v41 = vpop.permute.xlu1 %732  ;;  %698 = vst.msk [vmem:[%s1499_s24] sm:$0xff] %vm697_vm1, %v602_v42 }
 0x168   : > { %828 = vst.msk [vmem:[%s1499_s24 + $0x8] sm:$0xff] %vm826_vm2, %v733_v41  ;;  %621 = vrot.lane.b32.xlu0 %v1629_v21, %s1322_s20 }
 0x169   : > { %623 = vrot.lane.b32.xlu1 %v1623_v17, %s1322_s20 }
 0x16a   : > { %v634_v44 = vpop.permute.xlu0 %633 }
 0x16b   : > { %v765_v43 = vpop.permute.xlu1 %764  ;;  %714 = vst.msk [vmem:[%s1499_s24 + $0x80] sm:$0xff] %vm697_vm1, %v634_v44 }
 0x16c   : > { %844 = vst.msk [vmem:[%s1499_s24 + $0x88] sm:$0xff] %vm826_vm2, %v765_v43  ;;  %653 = vrot.lane.b32.xlu0 %v1632_v22, %s1322_s20 }
 0x16d   : > { %655 = vrot.lane.b32.xlu1 %v1626_v19, %s1322_s20 }
 0x16e   : > { %v731_v46 = vpop.permute.xlu0 %730 }
 0x16f   : > { %v862_v45 = vpop.permute.xlu1 %861  ;;  %827 = vst.msk [vmem:[%s1499_s24] sm:$0xff] %vm826_vm2, %v731_v46 }
 0x170   : > { %957 = vst.msk [vmem:[%s1499_s24 + $0x8] sm:$0xff] %vm955_vm3, %v862_v45  ;;  %750 = vrot.lane.b32.xlu0 %v1629_v21, %s1323_s25 }
 0x171   : > { %752 = vrot.lane.b32.xlu1 %v1623_v17, %s1323_s25 }
 0x172   : > { %v763_v48 = vpop.permute.xlu0 %762 }
 0x173   : > { %v894_v47 = vpop.permute.xlu1 %893  ;;  %843 = vst.msk [vmem:[%s1499_s24 + $0x80] sm:$0xff] %vm826_vm2, %v763_v48 }
 0x174   : > { %973 = vst.msk [vmem:[%s1499_s24 + $0x88] sm:$0xff] %vm955_vm3, %v894_v47  ;;  %782 = vrot.lane.b32.xlu0 %v1632_v22, %s1323_s25 }
 0x175   : > { %784 = vrot.lane.b32.xlu1 %v1626_v19, %s1323_s25 }
 0x176   : > { %v860_v50 = vpop.permute.xlu0 %859 }
 0x177   : > { %v608_v49 = vpop.permute.xlu1 %607  ;;  %956 = vst.msk [vmem:[%s1499_s24] sm:$0xff] %vm955_vm3, %v860_v50 }
 0x178   : > { %701 = vst.msk [vmem:[%s1499_s24 + $0x18] sm:$0xff] %vm697_vm1, %v608_v49  ;;  %879 = vrot.lane.b32.xlu0 %v1629_v21, %s1324_s26 }
 0x179   : > { %881 = vrot.lane.b32.xlu1 %v1623_v17, %s1324_s26 }
 0x17a   : > { %v892_v52 = vpop.permute.xlu0 %891 }
 0x17b   : > { %v640_v51 = vpop.permute.xlu1 %639  ;;  %972 = vst.msk [vmem:[%s1499_s24 + $0x80] sm:$0xff] %vm955_vm3, %v892_v52 }
 0x17c   : > { %717 = vst.msk [vmem:[%s1499_s24 + $0x98] sm:$0xff] %vm697_vm1, %v640_v51  ;;  %911 = vrot.lane.b32.xlu0 %v1632_v22, %s1324_s26 }
 0x17d   : > { %913 = vrot.lane.b32.xlu1 %v1626_v19, %s1324_s26 }
 0x17e   : > { %v638_v54 = vpop.permute.xlu0 %637 }
 0x17f   : > { %v737_v53 = vpop.permute.xlu1 %736  ;;  %716 = vst.msk [vmem:[%s1499_s24 + $0x90] sm:$0xff] %vm697_vm1, %v638_v54 }
 0x180   : > { %830 = vst.msk [vmem:[%s1499_s24 + $0x18] sm:$0xff] %vm826_vm2, %v737_v53  ;;  %625 = vrot.lane.b32.xlu0 %v1657_v29, %s1322_s20 }
 0x181   : > { %627 = vrot.lane.b32.xlu1 %v1651_v25, %s1322_s20 }
 0x182   : > { %v735_v56 = vpop.permute.xlu0 %734 }
 0x183   : > { %v769_v55 = vpop.permute.xlu1 %768 }
 0x184   : > { %846 = vst.msk [vmem:[%s1499_s24 + $0x98] sm:$0xff] %vm826_vm2, %v769_v55  ;;  %657 = vrot.lane.b32.xlu0 %v1660_v30, %s1322_s20 }
 0x185   : > { %659 = vrot.lane.b32.xlu1 %v1654_v27, %s1322_s20 }
 0x186   : > { %v767_v58 = vpop.permute.xlu0 %766 }
 0x187   : > { %v866_v57 = vpop.permute.xlu1 %865  ;;  %845 = vst.msk [vmem:[%s1499_s24 + $0x90] sm:$0xff] %vm826_vm2, %v767_v58 }
 0x188   : > { %959 = vst.msk [vmem:[%s1499_s24 + $0x18] sm:$0xff] %vm955_vm3, %v866_v57  ;;  %754 = vrot.lane.b32.xlu0 %v1657_v29, %s1323_s25 }
 0x189   : > { %756 = vrot.lane.b32.xlu1 %v1651_v25, %s1323_s25 }
 0x18a   : > { %v864_v60 = vpop.permute.xlu0 %863 }
 0x18b   : > { %v898_v59 = vpop.permute.xlu1 %897 }
 0x18c   : > { %975 = vst.msk [vmem:[%s1499_s24 + $0x98] sm:$0xff] %vm955_vm3, %v898_v59  ;;  %786 = vrot.lane.b32.xlu0 %v1660_v30, %s1323_s25 }
 0x18d   : > { %788 = vrot.lane.b32.xlu1 %v1654_v27, %s1323_s25 }
 0x18e   : > { %v896_v62 = vpop.permute.xlu0 %895 }
 0x18f   : > { %v606_v61 = vpop.permute.xlu1 %605  ;;  %974 = vst.msk [vmem:[%s1499_s24 + $0x90] sm:$0xff] %vm955_vm3, %v896_v62 }
 0x190   : > { %700 = vst.msk [vmem:[%s1499_s24 + $0x10] sm:$0xff] %vm697_vm1, %v606_v61  ;;  %883 = vrot.lane.b32.xlu0 %v1657_v29, %s1324_s26 }
 0x191   : > { %829 = vst.msk [vmem:[%s1499_s24 + $0x10] sm:$0xff] %vm826_vm2, %v735_v56  ;;  %885 = vrot.lane.b32.xlu1 %v1651_v25, %s1324_s26 }
 0x192   : > { %958 = vst.msk [vmem:[%s1499_s24 + $0x10] sm:$0xff] %vm955_vm3, %v864_v60  ;;  %v610_v0 = vpop.permute.xlu0 %609 }
 0x193   : > { %v612_v63 = vpop.permute.xlu1 %611  ;;  %702 = vst.msk [vmem:[%s1499_s24 + $0x20] sm:$0xff] %vm697_vm1, %v610_v0 }
 0x194   : > { %703 = vst.msk [vmem:[%s1499_s24 + $0x28] sm:$0xff] %vm697_vm1, %v612_v63  ;;  %915 = vrot.lane.b32.xlu0 %v1660_v30, %s1324_s26 }
 0x195   : > { %917 = vrot.lane.b32.xlu1 %v1654_v27, %s1324_s26 }
 0x196   : > { %v642_v2 = vpop.permute.xlu0 %641 }
 0x197   : > { %v644_v1 = vpop.permute.xlu1 %643  ;;  %718 = vst.msk [vmem:[%s1499_s24 + $0xa0] sm:$0xff] %vm697_vm1, %v642_v2 }
 0x198   : > { %719 = vst.msk [vmem:[%s1499_s24 + $0xa8] sm:$0xff] %vm697_vm1, %v644_v1  ;;  %629 = vrot.lane.b32.xlu0 %v1694_v34, %s1322_s20 }
 0x199   : > { %631 = vrot.lane.b32.xlu1 %v1691_v32, %s1322_s20 }
 0x19a   : > { %v739_v4 = vpop.permute.xlu0 %738 }
 0x19b   : > { %v741_v3 = vpop.permute.xlu1 %740  ;;  %831 = vst.msk [vmem:[%s1499_s24 + $0x20] sm:$0xff] %vm826_vm2, %v739_v4 }
 0x19c   : > { %832 = vst.msk [vmem:[%s1499_s24 + $0x28] sm:$0xff] %vm826_vm2, %v741_v3  ;;  %661 = vrot.lane.b32.xlu0 %v1710_v39, %s1322_s20 }
 0x19d   : > { %663 = vrot.lane.b32.xlu1 %v1707_v36, %s1322_s20 }
 0x19e   : > { %v771_v6 = vpop.permute.xlu0 %770 }
 0x19f   : > { %v773_v5 = vpop.permute.xlu1 %772  ;;  %847 = vst.msk [vmem:[%s1499_s24 + $0xa0] sm:$0xff] %vm826_vm2, %v771_v6 }
 0x1a0   : > { %848 = vst.msk [vmem:[%s1499_s24 + $0xa8] sm:$0xff] %vm826_vm2, %v773_v5  ;;  %758 = vrot.lane.b32.xlu0 %v1694_v34, %s1323_s25 }
 0x1a1   : > { %760 = vrot.lane.b32.xlu1 %v1691_v32, %s1323_s25 }
 0x1a2   : > { %v868_v8 = vpop.permute.xlu0 %867 }
 0x1a3   : > { %v870_v7 = vpop.permute.xlu1 %869  ;;  %960 = vst.msk [vmem:[%s1499_s24 + $0x20] sm:$0xff] %vm955_vm3, %v868_v8 }
 0x1a4   : > { %961 = vst.msk [vmem:[%s1499_s24 + $0x28] sm:$0xff] %vm955_vm3, %v870_v7  ;;  %790 = vrot.lane.b32.xlu0 %v1710_v39, %s1323_s25 }
 0x1a5   : > { %792 = vrot.lane.b32.xlu1 %v1707_v36, %s1323_s25 }
 0x1a6   : > { %v900_v10 = vpop.permute.xlu0 %899 }
 0x1a7   : > { %v902_v9 = vpop.permute.xlu1 %901  ;;  %976 = vst.msk [vmem:[%s1499_s24 + $0xa0] sm:$0xff] %vm955_vm3, %v900_v10 }
 0x1a8   : > { %977 = vst.msk [vmem:[%s1499_s24 + $0xa8] sm:$0xff] %vm955_vm3, %v902_v9  ;;  %887 = vrot.lane.b32.xlu0 %v1694_v34, %s1324_s26 }
 0x1a9   : > { %889 = vrot.lane.b32.xlu1 %v1691_v32, %s1324_s26 }
 0x1aa   : > { %v614_v12 = vpop.permute.xlu0 %613 }
 0x1ab   : > { %v616_v11 = vpop.permute.xlu1 %615  ;;  %704 = vst.msk [vmem:[%s1499_s24 + $0x30] sm:$0xff] %vm697_vm1, %v614_v12 }
 0x1ac   : > { %705 = vst.msk [vmem:[%s1499_s24 + $0x38] sm:$0xff] %vm697_vm1, %v616_v11  ;;  %919 = vrot.lane.b32.xlu0 %v1710_v39, %s1324_s26 }
 0x1ad   : > { %921 = vrot.lane.b32.xlu1 %v1707_v36, %s1324_s26 }
 0x1ae   : > { %v646_v14 = vpop.permute.xlu0 %645 }
 0x1af   : > { %v648_v13 = vpop.permute.xlu1 %647  ;;  %720 = vst.msk [vmem:[%s1499_s24 + $0xb0] sm:$0xff] %vm697_vm1, %v646_v14 }
 0x1b0   : > { %721 = vst.msk [vmem:[%s1499_s24 + $0xb8] sm:$0xff] %vm697_vm1, %v648_v13 }
 0x1b2   : > { %v743_v16 = vpop.permute.xlu0 %742 }
 0x1b3   : > { %v745_v15 = vpop.permute.xlu1 %744  ;;  %833 = vst.msk [vmem:[%s1499_s24 + $0x30] sm:$0xff] %vm826_vm2, %v743_v16 }
 0x1b4   : > { %834 = vst.msk [vmem:[%s1499_s24 + $0x38] sm:$0xff] %vm826_vm2, %v745_v15 }
 0x1b6   : > { %v775_v18 = vpop.permute.xlu0 %774 }
 0x1b7   : > { %v777_v17 = vpop.permute.xlu1 %776  ;;  %849 = vst.msk [vmem:[%s1499_s24 + $0xb0] sm:$0xff] %vm826_vm2, %v775_v18 }
 0x1b8   : > { %850 = vst.msk [vmem:[%s1499_s24 + $0xb8] sm:$0xff] %vm826_vm2, %v777_v17 }
 0x1ba   : > { %v872_v20 = vpop.permute.xlu0 %871 }
 0x1bb   : > { %v874_v19 = vpop.permute.xlu1 %873  ;;  %962 = vst.msk [vmem:[%s1499_s24 + $0x30] sm:$0xff] %vm955_vm3, %v872_v20 }
 0x1bc   : > { %963 = vst.msk [vmem:[%s1499_s24 + $0x38] sm:$0xff] %vm955_vm3, %v874_v19 }
 0x1be   : > { %v904_v22 = vpop.permute.xlu0 %903 }
 0x1bf   : > { %v906_v21 = vpop.permute.xlu1 %905  ;;  %978 = vst.msk [vmem:[%s1499_s24 + $0xb0] sm:$0xff] %vm955_vm3, %v904_v22 }
 0x1c0   : > { %979 = vst.msk [vmem:[%s1499_s24 + $0xb8] sm:$0xff] %vm955_vm3, %v906_v21 }
 0x1c2   : > { %v618_v24 = vpop.permute.xlu0 %617 }
 0x1c3   : > { %v620_v23 = vpop.permute.xlu1 %619  ;;  %706 = vst.msk [vmem:[%s1499_s24 + $0x40] sm:$0xff] %vm697_vm1, %v618_v24 }
 0x1c4   : > { %707 = vst.msk [vmem:[%s1499_s24 + $0x48] sm:$0xff] %vm697_vm1, %v620_v23 }
 0x1c6   : > { %v650_v26 = vpop.permute.xlu0 %649 }
 0x1c7   : > { %v652_v25 = vpop.permute.xlu1 %651  ;;  %722 = vst.msk [vmem:[%s1499_s24 + $0xc0] sm:$0xff] %vm697_vm1, %v650_v26 }
 0x1c8   : > { %723 = vst.msk [vmem:[%s1499_s24 + $0xc8] sm:$0xff] %vm697_vm1, %v652_v25 }
 0x1ca   : > { %v747_v28 = vpop.permute.xlu0 %746 }
 0x1cb   : > { %v749_v27 = vpop.permute.xlu1 %748  ;;  %835 = vst.msk [vmem:[%s1499_s24 + $0x40] sm:$0xff] %vm826_vm2, %v747_v28 }
 0x1cc   : > { %836 = vst.msk [vmem:[%s1499_s24 + $0x48] sm:$0xff] %vm826_vm2, %v749_v27 }
 0x1ce   : > { %v779_v30 = vpop.permute.xlu0 %778 }
 0x1cf   : > { %v781_v29 = vpop.permute.xlu1 %780  ;;  %851 = vst.msk [vmem:[%s1499_s24 + $0xc0] sm:$0xff] %vm826_vm2, %v779_v30 }
 0x1d0   : > { %852 = vst.msk [vmem:[%s1499_s24 + $0xc8] sm:$0xff] %vm826_vm2, %v781_v29 }
 0x1d2   : > { %v876_v32 = vpop.permute.xlu0 %875 }
 0x1d3   : > { %v878_v31 = vpop.permute.xlu1 %877  ;;  %964 = vst.msk [vmem:[%s1499_s24 + $0x40] sm:$0xff] %vm955_vm3, %v876_v32 }
 0x1d4   : > { %965 = vst.msk [vmem:[%s1499_s24 + $0x48] sm:$0xff] %vm955_vm3, %v878_v31 }
 0x1d6   : > { %v908_v34 = vpop.permute.xlu0 %907 }
 0x1d7   : > { %v910_v33 = vpop.permute.xlu1 %909  ;;  %980 = vst.msk [vmem:[%s1499_s24 + $0xc0] sm:$0xff] %vm955_vm3, %v908_v34 }
 0x1d8   : > { %981 = vst.msk [vmem:[%s1499_s24 + $0xc8] sm:$0xff] %vm955_vm3, %v910_v33 }
 0x1da   : > { %v622_v36 = vpop.permute.xlu0 %621 }
 0x1db   : > { %v624_v35 = vpop.permute.xlu1 %623  ;;  %708 = vst.msk [vmem:[%s1499_s24 + $0x50] sm:$0xff] %vm697_vm1, %v622_v36 }
 0x1dc   : > { %709 = vst.msk [vmem:[%s1499_s24 + $0x58] sm:$0xff] %vm697_vm1, %v624_v35 }
 0x1de   : > { %v654_v39 = vpop.permute.xlu0 %653 }
 0x1df   : > { %v656_v37 = vpop.permute.xlu1 %655  ;;  %724 = vst.msk [vmem:[%s1499_s24 + $0xd0] sm:$0xff] %vm697_vm1, %v654_v39 }
 0x1e0   : > { %725 = vst.msk [vmem:[%s1499_s24 + $0xd8] sm:$0xff] %vm697_vm1, %v656_v37 }
 0x1e2   : > { %v751_v40 = vpop.permute.xlu0 %750 }
 0x1e3   : > { %v753_v38 = vpop.permute.xlu1 %752  ;;  %837 = vst.msk [vmem:[%s1499_s24 + $0x50] sm:$0xff] %vm826_vm2, %v751_v40 }
 0x1e4   : > { %838 = vst.msk [vmem:[%s1499_s24 + $0x58] sm:$0xff] %vm826_vm2, %v753_v38 }
 0x1e6   : > { %v783_v42 = vpop.permute.xlu0 %782 }
 0x1e7   : > { %v785_v41 = vpop.permute.xlu1 %784  ;;  %853 = vst.msk [vmem:[%s1499_s24 + $0xd0] sm:$0xff] %vm826_vm2, %v783_v42 }
 0x1e8   : > { %854 = vst.msk [vmem:[%s1499_s24 + $0xd8] sm:$0xff] %vm826_vm2, %v785_v41 }
 0x1ea   : > { %v880_v44 = vpop.permute.xlu0 %879 }
 0x1eb   : > { %v882_v43 = vpop.permute.xlu1 %881  ;;  %966 = vst.msk [vmem:[%s1499_s24 + $0x50] sm:$0xff] %vm955_vm3, %v880_v44 }
 0x1ec   : > { %967 = vst.msk [vmem:[%s1499_s24 + $0x58] sm:$0xff] %vm955_vm3, %v882_v43 }
 0x1ee   : > { %v912_v46 = vpop.permute.xlu0 %911 }
 0x1ef   : > { %v914_v45 = vpop.permute.xlu1 %913  ;;  %982 = vst.msk [vmem:[%s1499_s24 + $0xd0] sm:$0xff] %vm955_vm3, %v912_v46 }
 0x1f0   : > { %983 = vst.msk [vmem:[%s1499_s24 + $0xd8] sm:$0xff] %vm955_vm3, %v914_v45 }
 0x1f2   : > { %v626_v48 = vpop.permute.xlu0 %625 }
 0x1f3   : > { %v628_v47 = vpop.permute.xlu1 %627  ;;  %710 = vst.msk [vmem:[%s1499_s24 + $0x60] sm:$0xff] %vm697_vm1, %v626_v48 }
 0x1f4   : > { %711 = vst.msk [vmem:[%s1499_s24 + $0x68] sm:$0xff] %vm697_vm1, %v628_v47 }
 0x1f6   : > { %v658_v50 = vpop.permute.xlu0 %657 }
 0x1f7   : > { %v660_v49 = vpop.permute.xlu1 %659  ;;  %726 = vst.msk [vmem:[%s1499_s24 + $0xe0] sm:$0xff] %vm697_vm1, %v658_v50 }
 0x1f8   : > { %727 = vst.msk [vmem:[%s1499_s24 + $0xe8] sm:$0xff] %vm697_vm1, %v660_v49 }
 0x1fa   : > { %v755_v52 = vpop.permute.xlu0 %754 }
 0x1fb   : > { %v757_v51 = vpop.permute.xlu1 %756  ;;  %839 = vst.msk [vmem:[%s1499_s24 + $0x60] sm:$0xff] %vm826_vm2, %v755_v52 }
 0x1fc   : > { %840 = vst.msk [vmem:[%s1499_s24 + $0x68] sm:$0xff] %vm826_vm2, %v757_v51 }
 0x1fe   : > { %v787_v54 = vpop.permute.xlu0 %786 }
 0x1ff   : > { %v789_v53 = vpop.permute.xlu1 %788  ;;  %855 = vst.msk [vmem:[%s1499_s24 + $0xe0] sm:$0xff] %vm826_vm2, %v787_v54 }
 0x200   : > { %856 = vst.msk [vmem:[%s1499_s24 + $0xe8] sm:$0xff] %vm826_vm2, %v789_v53 }
 0x202   : > { %v884_v56 = vpop.permute.xlu0 %883 }
 0x203   : > { %v886_v55 = vpop.permute.xlu1 %885  ;;  %968 = vst.msk [vmem:[%s1499_s24 + $0x60] sm:$0xff] %vm955_vm3, %v884_v56 }
 0x204   : > { %969 = vst.msk [vmem:[%s1499_s24 + $0x68] sm:$0xff] %vm955_vm3, %v886_v55 }
 0x206   : > { %v916_v58 = vpop.permute.xlu0 %915 }
 0x207   : > { %v918_v57 = vpop.permute.xlu1 %917  ;;  %984 = vst.msk [vmem:[%s1499_s24 + $0xe0] sm:$0xff] %vm955_vm3, %v916_v58 }
 0x208   : > { %985 = vst.msk [vmem:[%s1499_s24 + $0xe8] sm:$0xff] %vm955_vm3, %v918_v57 }
 0x20a   : > { %v630_v60 = vpop.permute.xlu0 %629 }
 0x20b   : > { %v632_v59 = vpop.permute.xlu1 %631  ;;  %712 = vst.msk [vmem:[%s1499_s24 + $0x70] sm:$0xff] %vm697_vm1, %v630_v60 }
 0x20c   : > { %713 = vst.msk [vmem:[%s1499_s24 + $0x78] sm:$0xff] %vm697_vm1, %v632_v59 }
 0x20e   : > { %v662_v62 = vpop.permute.xlu0 %661 }
 0x20f   : > { %v664_v61 = vpop.permute.xlu1 %663  ;;  %728 = vst.msk [vmem:[%s1499_s24 + $0xf0] sm:$0xff] %vm697_vm1, %v662_v62 }
 0x210   : > { %729 = vst.msk [vmem:[%s1499_s24 + $0xf8] sm:$0xff] %vm697_vm1, %v664_v61 }
 0x212   : > { %v759_v0 = vpop.permute.xlu0 %758 }
 0x213   : > { %v761_v63 = vpop.permute.xlu1 %760  ;;  %841 = vst.msk [vmem:[%s1499_s24 + $0x70] sm:$0xff] %vm826_vm2, %v759_v0 }
 0x214   : > { %842 = vst.msk [vmem:[%s1499_s24 + $0x78] sm:$0xff] %vm826_vm2, %v761_v63 }
 0x216   : > { %v791_v2 = vpop.permute.xlu0 %790 }
 0x217   : > { %v793_v1 = vpop.permute.xlu1 %792  ;;  %857 = vst.msk [vmem:[%s1499_s24 + $0xf0] sm:$0xff] %vm826_vm2, %v791_v2 }
 0x218   : > { %858 = vst.msk [vmem:[%s1499_s24 + $0xf8] sm:$0xff] %vm826_vm2, %v793_v1 }
 0x21a   : > { %v888_v4 = vpop.permute.xlu0 %887 }
 0x21b   : > { %v890_v3 = vpop.permute.xlu1 %889  ;;  %970 = vst.msk [vmem:[%s1499_s24 + $0x70] sm:$0xff] %vm955_vm3, %v888_v4 }
 0x21c   : > { %971 = vst.msk [vmem:[%s1499_s24 + $0x78] sm:$0xff] %vm955_vm3, %v890_v3 }
 0x21e   : > { %v920_v6 = vpop.permute.xlu0 %919 }
 0x21f   : > { %v922_v5 = vpop.permute.xlu1 %921  ;;  %986 = vst.msk [vmem:[%s1499_s24 + $0xf0] sm:$0xff] %vm955_vm3, %v920_v6 }
 0x220   : > { %987 = vst.msk [vmem:[%s1499_s24 + $0xf8] sm:$0xff] %vm955_vm3, %v922_v5 }
 0x221   : > { %1271 = shalt.err (!%p1268_p3)
}
 0x222   : > { %s1272_s9 = scalar_lea.hbm %s2059_s4, 4096  ;;  %s1276_s17 = scalar_lea.hbm %s2113_s3, 8192 }
 0x223   : > { %p1273_p4 = scmp.ne.s32.totalorder %s2059_s4, %s1272_s9  ;;  %p1277_p9 = scmp.lt.u32.totalorder %s2059_s4, %s2113_s3 }
 0x224   : > { %p1278_p10 = scmp.lt.u32.totalorder %s1276_s17, %s1272_s9  ;;  %p1280_p12 = scmp.lt.u32.totalorder %s1272_s9, %s2059_s4 }
 0x225   : > { %p1274_p7 = pnand %p1273_p4, %p1386_p5 }
 0x226   : > { %p1279_p11 = por %p1278_p10, %p1277_p9 }
 0x227   : > { %p1275_p8 = pneg %p1274_p7 }
 0x228   : > { %p1281_p13 = por %p1280_p12, %p1279_p11 }
 0x22a   : > { %p1282_p0 = pnand %p1281_p13, %p1275_p8 }
 0x22c   : > { %1285 = shalt.err (!%p1282_p0)
}
 0x22d   : > { %s1326_s24 = smov 128   ;;  %s1327_s25 = smov 8  }
 0x22e   : > { %1214 = dma.vmem_to_hbm [thread:$0]  (%p1386_p5), %s2061_s28, 4096, %s2059_s4, %s2069_s16, %s1326_s24, %s1326_s24, %s1327_s25  }
 0x22f PF: > { %p1220_p1 = scmp.ge.s32.totalorder %s1320_s15, 2  ;;  %s1017_s26 = sand.u32 1, %s1308_s12  }
 0x230   : > { %s1018_s27 = scalar_lea.sflag [#allocation3], %s1017_s26 }
 0x231   : > { %p1217_p2 = pnand %p1220_p1, %p1390_p6 }
 0x233   : > { %1303 = dma.done.wait (!%p1217_p2), %s1018_s27, 4096  }
 0x234   : > { %1305 = vsyncadd (!%p1217_p2), %s1018_s27, 4294963200  ;;  %p13_p3 = scmp.ge.s32.totalorder %s1373_s18, 4   ;;  %s2116_s12 = smov %s1312_s13 }
 0x235   : > { %s2117_s13 = smov %s1316_s14  ;;  %s2118_s14 = smov %s1384_s21 }
 0x236   : > { %s2119_s15 = smov %s1373_s18  ;;  %15 = sbr.rel (!%p13_p3) target bundleno = 3 (0x3), region = 67 }
 0x23d   :  { %1023 = vsyncpa [#allocation3], 1 }
 0x23e   :  { %1025 = vsyncpa [#allocation3 + $0x1], 1 }

</bundles_post_ra>
